<compile_context>
chip_gen: v5e
topology: v5e:2x2
jax: 0.10.0
libtpu: 0.0.40
codegen_flags: <defaults>
</compile_context>

<pallas_src>
import jax
import jax.numpy as jnp
from jax.experimental import pallas as pl
from jax.experimental.pallas import tpu as pltpu

IGNORE_INDEX = 255
SMOOTH = 1.0                    # DiceLoss() default smooth used inside CE_DiceLoss
TARGET_BLOCK_BYTES = 2 << 20    # ~2 MiB of logits HBM traffic per grid step


def _round_up(x, m):
    return (x + m - 1) // m * m


def _round_down_128(x):
    return max(128, (x // 128) * 128)


def _make_kernel(hw, tile_p, num_classes, need_mask):
    """Build the per-tile kernel; static config is closed over at trace time."""

    def kernel(scalars_ref, logits_ref, labels_ref, out_ref, acc_ref):
        # scalars_ref: SMEM (2,) int32 -> [global label min, remap flag]
        # logits_ref : VMEM (C, tile_p) native dtype
        # labels_ref : VMEM (1, tile_p) int32
        # out_ref    : VMEM (8, 128) f32 per-batch partials (sublanes 0..2)
        # acc_ref    : VMEM (8, tile_p) f32; rows 0..2 = [ce_sum, valid_cnt, inter]
        i = pl.program_id(1)

        @pl.when(i == 0)
        def _():
            acc_ref[...] = jnp.zeros_like(acc_ref)

        logits = logits_ref[...].astype(jnp.float32)          # (C, TP), cast in VMEM
        labels = labels_ref[...]                              # (1, TP) int32
        tmin = scalars_ref[0]                                 # global min label
        replace = scalars_ref[1]                              # 1 if ignore -> min remap

        if need_mask:
            lane = jax.lax.broadcasted_iota(jnp.int32, (1, tile_p), 1)
            pmask = (i * tile_p + lane) < hw                  # real-pixel lane mask
            # Neutralize stale tail lanes BEFORE exp so Inf/NaN in un-DMA'd VMEM
            # cannot leak through denom/inv (Inf * 0 == NaN).
            logits = jnp.where(pmask, logits, 0.0)

        # stable softmax pieces over the class (sublane) axis
        m = jnp.max(logits, axis=0, keepdims=True)            # (1, TP)
        z = logits - m                                        # (C, TP)
        ez = jnp.exp(z)                                       # (C, TP)
        denom = jnp.sum(ez, axis=0, keepdims=True)            # (1, TP)
        inv = pl.reciprocal(denom, approx=False)              # (1, TP)
        logden = jnp.log(denom)                               # (1, TP)

        # DiceLoss ignore remap; a single (C, TP) one-hot select (for z[label])
        is_ign = labels == IGNORE_INDEX
        labels_d = jnp.where((replace != 0) & is_ign, tmin, labels)
        cls = jax.lax.broadcasted_iota(jnp.int32, (num_classes, tile_p), 0)
        gz = jnp.sum(jnp.where(cls == labels_d, z, 0.0), axis=0, keepdims=True)

        valid_ce = jnp.logical_not(is_ign)                    # CE ignore mask
        # dice validity: remapped label hits a real class (guards exp(0)=1 bug
        # for non-remapped ignore pixels and for stale tail-lane labels)
        valid_cls = jnp.logical_and(labels_d >= 0, labels_d < num_classes)
        if need_mask:
            valid_ce = jnp.logical_and(valid_ce, pmask)
            valid_cls = jnp.logical_and(valid_cls, pmask)

        # softmax[label_d] gated by validity; (1, TP) EUP/VPU work only
        int_lane = valid_cls.astype(jnp.float32) * jnp.exp(gz) * inv
        ce_lane = jnp.where(valid_ce, logden - gz, 0.0)       # -log_softmax[label]
        cnt_lane = valid_ce.astype(jnp.float32)

        # lane-wise accumulation into the packed accumulator (hot path = VPU only)
        acc_ref[0:1, :] += ce_lane
        acc_ref[1:2, :] += cnt_lane
        acc_ref[2:3, :] += int_lane

        @pl.when(i == pl.num_programs(1) - 1)
        def _():
            ce_sum = jnp.sum(acc_ref[0:1, :])
            cnt = jnp.sum(acc_ref[1:2, :])
            inter = jnp.sum(acc_ref[2:3, :])
            sub = jax.lax.broadcasted_iota(jnp.int32, (8, 128), 0)
            out_ref[...] = (jnp.where(sub == 0, ce_sum, 0.0)
                            + jnp.where(sub == 1, cnt, 0.0)
                            + jnp.where(sub == 2, inter, 0.0))

    return kernel


@jax.jit
def ce_dice_loss(output, target):
    """output: (N, C, H, W) logits (any float dtype); target: (N, H, W) int labels."""
    N, C, H, W = output.shape
    hw = H * W
    itemsize = jnp.dtype(output.dtype).itemsize
    c_pad = _round_up(C, 8)            # physical sublane padding of the class axis

    # adaptive lane tile: ~TARGET_BLOCK_BYTES of logits per step, multiple of 128
    tile_p = _round_down_128(TARGET_BLOCK_BYTES // (C * itemsize))
    tile_p = min(tile_p, _round_up(hw, 128))

    # generation-aware VMEM cap (~96 MiB on v5e/v6e, ~48 MiB on v7x)
    try:
        vmem_phys = int(getattr(pltpu.get_tpu_info(), "vmem_capacity_bytes",
                                64 << 20))
    except Exception:
        vmem_phys = 64 << 20
    vmem_cap = (vmem_phys * 3) // 4

    def vmem_need(tp):
        logits_blk = c_pad * tp * itemsize          # sublane-padded input buffer
        labels_blk = 8 * tp * 4                     # (1, tp) int32 -> 8 sublanes
        pipeline = 2 * (logits_blk + labels_blk)    # double-buffered inputs
        f32_work = 5 * c_pad * tp * 4               # f32 cast / z / ez / iota / select
        acc = 8 * tp * 4                            # packed (8, tp) accumulator
        return pipeline + f32_work + acc + (6 << 20)

    # shrink the tile (not the limit) until the working set fits under the cap
    while tile_p > 128 and vmem_need(tile_p) > vmem_cap:
        tile_p = _round_down_128(tile_p // 2)
    vmem_limit = int(min(vmem_cap, max(vmem_need(tile_p), 16 << 20)))

    need_mask = (hw % tile_p) != 0
    grid = (N, pl.cdiv(hw, tile_p))

    # free reshapes only: no transpose, no pad, no dtype change in HBM
    logits = output.reshape(N, C, hw)
    labels = target.reshape(N, 1, hw).astype(jnp.int32)

    # DiceLoss remap condition (min/max/any fuse into one label pass under jit):
    #   if ignore_index not in range(target.min(), target.max()) and any(== ignore):
    #       remap ignore -> target.min()
    tmin = jnp.min(labels).astype(jnp.int32)
    tmax = jnp.max(labels).astype(jnp.int32)
    has_ign = jnp.any(labels == IGNORE_INDEX)
    in_range = (tmin <= IGNORE_INDEX) & (IGNORE_INDEX < tmax)
    replace = (jnp.logical_not(in_range) & has_ign).astype(jnp.int32)
    scalars = jnp.stack([tmin, replace])            # (2,) int32, SMEM-prefetched

    kernel = _make_kernel(hw, tile_p, C, need_mask)
    partials = pl.pallas_call(
        kernel,
        out_shape=jax.ShapeDtypeStruct((N, 8, 128), jnp.float32),
        grid_spec=pltpu.PrefetchScalarGridSpec(
            num_scalar_prefetch=1,
            grid=grid,
            in_specs=[
                # batch squeezed; class axis full; pixel axis tiled onto lanes
                pl.BlockSpec((None, C, tile_p), lambda n, i, s: (n, 0, i)),
                pl.BlockSpec((None, 1, tile_p), lambda n, i, s: (n, 0, i)),
            ],
            out_specs=pl.BlockSpec((None, 8, 128), lambda n, i, s: (n, 0, 0)),
            scratch_shapes=[pltpu.VMEM((8, tile_p), jnp.float32)],
        ),
        compiler_params=pltpu.CompilerParams(
            # per-batch partial outputs -> batch axis is independent (megacore
            # split on v7x); pixel axis feeds the lane accumulator -> reduction.
            dimension_semantics=("parallel", "arbitrary"),
            vmem_limit_bytes=vmem_limit,
        ),
    )(scalars, logits, labels)

    # tiny final reduction over the per-batch partials (done in XLA)
    ce_sums = partials[:, 0, 0]
    cnts = partials[:, 1, 0]
    inters = partials[:, 2, 0]
    cnt = jnp.sum(cnts)
    ce_loss = jnp.sum(ce_sums) / cnt     # NaN when every pixel is ignore (== torch)
    inter = jnp.sum(inters)
    psum = jnp.float32(N * hw)           # softmax sums to 1 per pixel (exact count)
    tsum = jnp.where(replace != 0, psum, cnt)
    dice_loss = 1.0 - (2.0 * inter + SMOOTH) / (psum + tsum + SMOOTH)
    return ce_loss + dice_loss


def _reference_loss(output, target):
    """Pure-JAX reference mirroring the PyTorch module, for a sanity check."""
    N, C, H, W = output.shape
    logits = output.astype(jnp.float32)
    logp = jax.nn.log_softmax(logits, axis=1)
    valid = target != IGNORE_INDEX
    tgt_safe = jnp.where(valid, target, 0)
    nll = -jnp.take_along_axis(logp, tgt_safe[:, None], axis=1)[:, 0]
    ce = jnp.sum(jnp.where(valid, nll, 0.0)) / jnp.sum(valid)

    tmin = jnp.min(target)
    tmax = jnp.max(target)
    has = jnp.any(target == IGNORE_INDEX)
    in_range = (tmin <= IGNORE_INDEX) & (IGNORE_INDEX < tmax)
    replace = jnp.logical_not(in_range) & has
    tgt_d = jnp.where(replace & (target == IGNORE_INDEX), tmin, target)
    onehot = jax.nn.one_hot(tgt_d, C, axis=1, dtype=jnp.float32)
    p = jax.nn.softmax(logits, axis=1)
    inter = jnp.sum(p * onehot)
    dice = 1.0 - (2.0 * inter + SMOOTH) / (jnp.sum(p) + jnp.sum(onehot) + SMOOTH)
    return ce + dice


if __name__ == "__main__":
    key = jax.random.PRNGKey(0)
    k1, k2, k3 = jax.random.split(key, 3)

    # Case 1: canonical small shape with ignore pixels (exercises the remap path)
    N, C, H, W = 2, 4, 16, 16
    output = jax.random.normal(k1, (N, C, H, W), dtype=jnp.float32)
    target = jax.random.randint(k2, (N, H, W), 0, C, dtype=jnp.int32)
    target = target.at[0, 0, 0].set(IGNORE_INDEX)
    target = target.at[1, 3, 7].set(IGNORE_INDEX)
    loss = jax.block_until_ready(ce_dice_loss(output, target))
    ref = _reference_loss(output, target)
    assert jnp.allclose(loss, ref, atol=1e-5, rtol=1e-5), (loss, ref)

    # Case 2: larger spatial extent -> multiple lane tiles + a partial tail tile
    # (exercises the no-pad masked path and the per-tile accumulation), no ignore
    # pixels (exercises the no-remap branch).
    N2, C2, H2, W2 = 1, 32, 144, 144
    out2 = jax.random.normal(k3, (N2, C2, H2, W2), dtype=jnp.float32)
    tgt2 = jax.random.randint(jax.random.PRNGKey(7), (N2, H2, W2), 0, C2,
                              dtype=jnp.int32)
    loss2 = jax.block_until_ready(ce_dice_loss(out2, tgt2))
    ref2 = _reference_loss(out2, tgt2)
    assert jnp.allclose(loss2, ref2, atol=1e-4, rtol=1e-5), (loss2, ref2)

    print("KERNEL_OK")
</pallas_src>

<mosaic_0001>
module attributes {stable_mosaic.version = 11 : i64} {
  func.func @kernel(%arg0: i32, %arg1: i32, %arg2: memref<2xi32, #tpu.memory_space<smem>>, %arg3: memref<1x4x256xf32, #tpu.memory_space<vmem>>, %arg4: memref<1x1x256xi32, #tpu.memory_space<vmem>>, %arg5: memref<1x8x128xf32, #tpu.memory_space<vmem>>, %arg6: memref<8x256xf32, #tpu.memory_space<vmem>>) attributes {dimension_semantics = [#tpu.dimension_semantics<parallel>, #tpu.dimension_semantics<arbitrary>], iteration_bounds = array<i64: 2, 1>, scalar_prefetch = 1 : i64, scratch_operands = 1 : i64, tpu.core_type = #tpu.core_type<tc>, window_params = [{transform_indices = @transform_0, window_bounds = array<i64: 1, 4, 256>}, {transform_indices = @transform_1, window_bounds = array<i64: 1, 1, 256>}, {transform_indices = @transform_2, window_bounds = array<i64: 1, 8, 128>}]} {
    %c0_i32 = arith.constant 0 : i32
    %0 = arith.cmpi eq, %arg1, %c0_i32 : i32
    %1 = arith.extui %0 : i1 to i32
    %c0_i32_0 = arith.constant 0 : i32
    %2 = arith.cmpi ne, %1, %c0_i32_0 : i32
    scf.if %2 {
      %cst_27 = arith.constant 0.000000e+00 : f32
      %60 = vector.broadcast %cst_27 : f32 to vector<8x256xf32>
      %c0_28 = arith.constant 0 : index
      %c0_29 = arith.constant 0 : index
      %61 = vector.load %arg6[%c0_28, %c0_29] : memref<8x256xf32, #tpu.memory_space<vmem>>, vector<8x256xf32>
      tpu.vector_store %arg6[%c0_28, %c0_29], %60 {strides = array<i32>} : memref<8x256xf32, #tpu.memory_space<vmem>>, vector<8x256xf32>,
    } else {
    }
    %c0 = arith.constant 0 : index
    %c0_1 = arith.constant 0 : index
    %c0_2 = arith.constant 0 : index
    %3 = vector.load %arg3[%c0, %c0_1, %c0_2] : memref<1x4x256xf32, #tpu.memory_space<vmem>>, vector<1x4x256xf32>
    %4 = vector.shape_cast %3 : vector<1x4x256xf32> to vector<4x256xf32>
    %c0_3 = arith.constant 0 : index
    %c0_4 = arith.constant 0 : index
    %c0_5 = arith.constant 0 : index
    %5 = vector.load %arg4[%c0_3, %c0_4, %c0_5] : memref<1x1x256xi32, #tpu.memory_space<vmem>>, vector<1x1x256xi32>
    %6 = vector.shape_cast %5 : vector<1x1x256xi32> to vector<1x256xi32>
    %c0_6 = arith.constant 0 : index
    %7 = memref.load %arg2[%c0_6] : memref<2xi32, #tpu.memory_space<smem>>
    %c1 = arith.constant 1 : index
    %8 = memref.load %arg2[%c1] : memref<2xi32, #tpu.memory_space<smem>>
    %cst = arith.constant dense<0xFF800000> : vector<256xf32>
    %9 = vector.multi_reduction <maximumf>, %4, %cst [0] : vector<4x256xf32> to vector<256xf32>
    %10 = vector.shape_cast %9 : vector<256xf32> to vector<1x256xf32>
    %11 = vector.broadcast %10 : vector<1x256xf32> to vector<4x256xf32>
    %12 = arith.subf %4, %11 : vector<4x256xf32>
    %13 = math.exp %12 : vector<4x256xf32>
    %cst_7 = arith.constant dense<0.000000e+00> : vector<256xf32>
    %14 = vector.multi_reduction <add>, %13, %cst_7 [0] : vector<4x256xf32> to vector<256xf32>
    %15 = vector.shape_cast %14 : vector<256xf32> to vector<1x256xf32>
    %16 = tpu.reciprocal %15 : vector<1x256xf32> -> vector<1x256xf32>
    %17 = math.log %15 : vector<1x256xf32>
    %c255_i32 = arith.constant 255 : i32
    %18 = vector.broadcast %c255_i32 : i32 to vector<1x256xi32>
    %19 = arith.cmpi eq, %6, %18 : vector<1x256xi32>
    %c0_i32_8 = arith.constant 0 : i32
    %20 = arith.cmpi ne, %8, %c0_i32_8 : i32
    %21 = vector.broadcast %20 : i1 to vector<1x256xi1>
    %22 = arith.andi %21, %19 : vector<1x256xi1>
    %23 = vector.broadcast %7 : i32 to vector<1x256xi32>
    %24 = arith.select %22, %23, %6 : vector<1x256xi1>, vector<1x256xi32>
    %25 = tpu.iota {dimensions = array<i32: 0>} : vector<4x256xi32>
    %26 = vector.broadcast %24 : vector<1x256xi32> to vector<4x256xi32>
    %27 = arith.cmpi eq, %25, %26 : vector<4x256xi32>
    %cst_9 = arith.constant 0.000000e+00 : f32
    %28 = vector.broadcast %cst_9 : f32 to vector<4x256xf32>
    %29 = arith.select %27, %12, %28 : vector<4x256xi1>, vector<4x256xf32>
    %cst_10 = arith.constant dense<0.000000e+00> : vector<256xf32>
    %30 = vector.multi_reduction <add>, %29, %cst_10 [0] : vector<4x256xf32> to vector<256xf32>
    %31 = vector.shape_cast %30 : vector<256xf32> to vector<1x256xf32>
    %cst_11 = arith.constant dense<true> : vector<1x256xi1>
    %32 = arith.xori %19, %cst_11 : vector<1x256xi1>
    %c0_i32_12 = arith.constant 0 : i32
    %33 = vector.broadcast %c0_i32_12 : i32 to vector<1x256xi32>
    %34 = arith.cmpi sge, %24, %33 : vector<1x256xi32>
    %c4_i32 = arith.constant 4 : i32
    %35 = vector.broadcast %c4_i32 : i32 to vector<1x256xi32>
    %36 = arith.cmpi slt, %24, %35 : vector<1x256xi32>
    %37 = arith.andi %34, %36 : vector<1x256xi1>
    %38 = arith.extui %37 : vector<1x256xi1> to vector<1x256xi32>
    %39 = arith.sitofp %38 : vector<1x256xi32> to vector<1x256xf32>
    %40 = math.exp %31 : vector<1x256xf32>
    %41 = arith.mulf %39, %40 : vector<1x256xf32>
    %42 = arith.mulf %41, %16 : vector<1x256xf32>
    %43 = arith.subf %17, %31 : vector<1x256xf32>
    %cst_13 = arith.constant 0.000000e+00 : f32
    %44 = vector.broadcast %cst_13 : f32 to vector<1x256xf32>
    %45 = arith.select %32, %43, %44 : vector<1x256xi1>, vector<1x256xf32>
    %46 = arith.extui %32 : vector<1x256xi1> to vector<1x256xi32>
    %47 = arith.sitofp %46 : vector<1x256xi32> to vector<1x256xf32>
    %c0_14 = arith.constant 0 : index
    %c0_15 = arith.constant 0 : index
    %48 = vector.load %arg6[%c0_14, %c0_15] : memref<8x256xf32, #tpu.memory_space<vmem>>, vector<1x256xf32>
    %49 = arith.addf %48, %45 : vector<1x256xf32>
    %c0_16 = arith.constant 0 : index
    %c0_17 = arith.constant 0 : index
    %50 = vector.load %arg6[%c0_16, %c0_17] : memref<8x256xf32, #tpu.memory_space<vmem>>, vector<1x256xf32>
    tpu.vector_store %arg6[%c0_16, %c0_17], %49 {strides = array<i32>} : memref<8x256xf32, #tpu.memory_space<vmem>>, vector<1x256xf32>,
    %c1_18 = arith.constant 1 : index
    %c0_19 = arith.constant 0 : index
    %51 = vector.load %arg6[%c1_18, %c0_19] : memref<8x256xf32, #tpu.memory_space<vmem>>, vector<1x256xf32>
    %52 = arith.addf %51, %47 : vector<1x256xf32>
    %c1_20 = arith.constant 1 : index
    %c0_21 = arith.constant 0 : index
    %53 = vector.load %arg6[%c1_20, %c0_21] : memref<8x256xf32, #tpu.memory_space<vmem>>, vector<1x256xf32>
    tpu.vector_store %arg6[%c1_20, %c0_21], %52 {strides = array<i32>} : memref<8x256xf32, #tpu.memory_space<vmem>>, vector<1x256xf32>,
    %c2 = arith.constant 2 : index
    %c0_22 = arith.constant 0 : index
    %54 = vector.load %arg6[%c2, %c0_22] : memref<8x256xf32, #tpu.memory_space<vmem>>, vector<1x256xf32>
    %55 = arith.addf %54, %42 : vector<1x256xf32>
    %c2_23 = arith.constant 2 : index
    %c0_24 = arith.constant 0 : index
    %56 = vector.load %arg6[%c2_23, %c0_24] : memref<8x256xf32, #tpu.memory_space<vmem>>, vector<1x256xf32>
    tpu.vector_store %arg6[%c2_23, %c0_24], %55 {strides = array<i32>} : memref<8x256xf32, #tpu.memory_space<vmem>>, vector<1x256xf32>,
    %c0_i32_25 = arith.constant 0 : i32
    %57 = arith.cmpi eq, %arg1, %c0_i32_25 : i32
    %58 = arith.extui %57 : i1 to i32
    %c0_i32_26 = arith.constant 0 : i32
    %59 = arith.cmpi ne, %58, %c0_i32_26 : i32
    scf.if %59 {
      %c0_27 = arith.constant 0 : index
      %c0_28 = arith.constant 0 : index
      %60 = vector.load %arg6[%c0_27, %c0_28] : memref<8x256xf32, #tpu.memory_space<vmem>>, vector<1x256xf32>
      %61 = vector.shape_cast %60 : vector<1x256xf32> to vector<1x1x256xf32>
      %cst_29 = arith.constant dense<0.000000e+00> : vector<1xf32>
      %62 = vector.multi_reduction <add>, %61, %cst_29 [1, 2] : vector<1x1x256xf32> to vector<1xf32>
      %63 = vector.shape_cast %62 : vector<1xf32> to vector<1x1x1xf32>
      %64 = vector.extract %63[0, 0, 0] : f32 from vector<1x1x1xf32>
      %c1_30 = arith.constant 1 : index
      %c0_31 = arith.constant 0 : index
      %65 = vector.load %arg6[%c1_30, %c0_31] : memref<8x256xf32, #tpu.memory_space<vmem>>, vector<1x256xf32>
      %66 = vector.shape_cast %65 : vector<1x256xf32> to vector<1x1x256xf32>
      %cst_32 = arith.constant dense<0.000000e+00> : vector<1xf32>
      %67 = vector.multi_reduction <add>, %66, %cst_32 [1, 2] : vector<1x1x256xf32> to vector<1xf32>
      %68 = vector.shape_cast %67 : vector<1xf32> to vector<1x1x1xf32>
      %69 = vector.extract %68[0, 0, 0] : f32 from vector<1x1x1xf32>
      %c2_33 = arith.constant 2 : index
      %c0_34 = arith.constant 0 : index
      %70 = vector.load %arg6[%c2_33, %c0_34] : memref<8x256xf32, #tpu.memory_space<vmem>>, vector<1x256xf32>
      %71 = vector.shape_cast %70 : vector<1x256xf32> to vector<1x1x256xf32>
      %cst_35 = arith.constant dense<0.000000e+00> : vector<1xf32>
      %72 = vector.multi_reduction <add>, %71, %cst_35 [1, 2] : vector<1x1x256xf32> to vector<1xf32>
      %73 = vector.shape_cast %72 : vector<1xf32> to vector<1x1x1xf32>
      %74 = vector.extract %73[0, 0, 0] : f32 from vector<1x1x1xf32>
      %75 = tpu.iota {dimensions = array<i32: 0>} : vector<8x128xi32>
      %c0_i32_36 = arith.constant 0 : i32
      %76 = vector.broadcast %c0_i32_36 : i32 to vector<8x128xi32>
      %77 = arith.cmpi eq, %75, %76 : vector<8x128xi32>
      %cst_37 = arith.constant 0.000000e+00 : f32
      %78 = vector.broadcast %64 : f32 to vector<8x128xf32>
      %79 = vector.broadcast %cst_37 : f32 to vector<8x128xf32>
      %80 = arith.select %77, %78, %79 : vector<8x128xi1>, vector<8x128xf32>
      %c1_i32 = arith.constant 1 : i32
      %81 = vector.broadcast %c1_i32 : i32 to vector<8x128xi32>
      %82 = arith.cmpi eq, %75, %81 : vector<8x128xi32>
      %cst_38 = arith.constant 0.000000e+00 : f32
      %83 = vector.broadcast %69 : f32 to vector<8x128xf32>
      %84 = vector.broadcast %cst_38 : f32 to vector<8x128xf32>
      %85 = arith.select %82, %83, %84 : vector<8x128xi1>, vector<8x128xf32>
      %86 = arith.addf %80, %85 : vector<8x128xf32>
      %c2_i32 = arith.constant 2 : i32
      %87 = vector.broadcast %c2_i32 : i32 to vector<8x128xi32>
      %88 = arith.cmpi eq, %75, %87 : vector<8x128xi32>
      %cst_39 = arith.constant 0.000000e+00 : f32
      %89 = vector.broadcast %74 : f32 to vector<8x128xf32>
      %90 = vector.broadcast %cst_39 : f32 to vector<8x128xf32>
      %91 = arith.select %88, %89, %90 : vector<8x128xi1>, vector<8x128xf32>
      %92 = arith.addf %86, %91 : vector<8x128xf32>
      %c0_40 = arith.constant 0 : index
      %c0_41 = arith.constant 0 : index
      %c0_42 = arith.constant 0 : index
      %93 = vector.load %arg5[%c0_40, %c0_41, %c0_42] : memref<1x8x128xf32, #tpu.memory_space<vmem>>, vector<1x8x128xf32>
      %94 = vector.shape_cast %93 : vector<1x8x128xf32> to vector<8x128xf32>
      %95 = vector.shape_cast %92 : vector<8x128xf32> to vector<1x8x128xf32>
      tpu.vector_store %arg5[%c0_40, %c0_41, %c0_42], %95 {strides = array<i32>} : memref<1x8x128xf32, #tpu.memory_space<vmem>>, vector<1x8x128xf32>,
    } else {
    }
    return
  }
  func.func @transform_0(%arg0: i32, %arg1: i32, %arg2: memref<2xi32, #tpu.memory_space<smem>>) -> (i32, i32, i32) {
    %c0_i32 = arith.constant 0 : i32
    %c0_i32_0 = arith.constant 0 : i32
    return %arg0, %c0_i32, %arg1 : i32, i32, i32
  }
  func.func @transform_1(%arg0: i32, %arg1: i32, %arg2: memref<2xi32, #tpu.memory_space<smem>>) -> (i32, i32, i32) {
    %c0_i32 = arith.constant 0 : i32
    %c0_i32_0 = arith.constant 0 : i32
    return %arg0, %c0_i32, %arg1 : i32, i32, i32
  }
  func.func @transform_2(%arg0: i32, %arg1: i32, %arg2: memref<2xi32, #tpu.memory_space<smem>>) -> (i32, i32, i32) {
    %c0_i32 = arith.constant 0 : i32
    %c0_i32_0 = arith.constant 0 : i32
    %c0_i32_1 = arith.constant 0 : i32
    return %arg0, %c0_i32, %c0_i32_0 : i32, i32, i32
  }
}

</mosaic_0001>

<bundles_post_ra>
// kernel: ce_dice_loss.1
= control target key start
LH: loop header
LB: loop body
LE: loop exit
PB: predicated region body
PF: predicated region fallthrough
CT: control target
= control target key end

     0   :  { %s641_s15 = smov [#allocation4]   ;;  %s780_s0 = inlined_call_operand.vmem [shape: s32[2], index: 0, kind: input, shape index: {}]   ;;  %s781_s1 = inlined_call_operand.vmem [shape: f32[2,4,256], index: 1, kind: input, shape index: {}]   ;;  %s782_s2 = inlined_call_operand.vmem [shape: s32[2,1,256], index: 2, kind: input, shape index: {}]   ;;  %s783_s3 = inlined_call_operand.vmem [shape: f32[2,8,128], index: 3, kind: output, shape index: {}]  }
   0x1   :  { %s9_s14 = sshll.u32 %s780_s0, 4  ;;  %s10_s14 = int_to_ptr.vmem [resolvable:$true] %s9_s14 }
   0x2   :  { %12 = dma.vmem_to_smem %s10_s14, 16, %s641_s15, [#allocation3] }
   0x3   :  { %627 = dma.done.wait [#allocation3], 16 }
   0x4   :  { %628 = vsyncadd [#allocation3], 4294967280 }
   0x5   :  { %15 = sfence }
   0x6   :  { %s667_s16 = smov 0   ;;  %s669_s17 = smov 0  }
   0x7   :  { %s671_s18 = smov 0  }
   0x8 LB: > { %s33_s0 = sadd.s32 1, %s635_s17  ;;  %p545_p0 = scmp.ge.s32.totalorder %s639_s18, 1  ;;  %s639_s18 = sphi %s671_s18, %s21_s18   ;;  %s635_s17 = sphi %s669_s17, %s793_s17   ;;  %s631_s16 = sphi %s667_s16, %s792_s16  }
   0x9   : > { %p35_p1 = scmp.ge.s32.totalorder %s33_s0, 2  ;;  %p156_p2 = scmp.lt.s32.totalorder %s639_s18, 3 }
   0xb   : > { %s795_s0 = smov (%p35_p1, %s33_s0), 0  ;;  %p157_p3 = pnand %p545_p0, %p156_p2 }
   0xc   : > { %p190_p4 = scmp.lt.s32.totalorder (!%p157_p3), %s631_s16, 1  ;;  %s550_s23 = sld [smem:[#allocation4 + $0x1]] (!%p157_p3) }
   0xd   : > { %160 = sbr.rel (%p157_p3) target bundleno = 303 (0x12f), region = 28  ;;  %s220_s29 = sld [smem:[#allocation4]] (!%p157_p3) }
  0x12   : > { %v642_v0 = vmov 0.0   ;;  %s797_s16 = smov (!%p190_p4, %s631_s16), 1  ;;  %vm228_vm0 = vcmask 1043456   ;;  %p304_p5 = scmp.ne.s32.totalorder %s550_s23, 0  ;;  %v311_v26 = vlaneseq  ;;  %vm643_vm4 = vmmov 1  }
  0x13   : > { %216 = vst [vmem:[#allocation2] sm:$0xff] %v642_v0  ;;  %s555_s19 = sshll.u32 %s797_s16, 3  ;;  %s548_s24 = sshll.u32 %s797_s16, 1  ;;  %v309_v25 = vstv %s220_s29  ;;  %vm352_vm9 = vcmask 1040384  }
  0x14   : > { %217 = vst [vmem:[#allocation2 + $0x8] sm:$0xff] %v642_v0  ;;  %s197_s22 = scalar_lea.vmem %s781_s1, %s555_s19  ;;  %s206_s28 = scalar_lea.vmem %s782_s2, %s548_s24  ;;  %v707_v32 = vshrl.u32 %v311_v26, 7  ;;  %vm721_vm8 = vcmp.lt.s32.totalorder %v311_v26, 256 }
  0x15   : > { %v218_v1 = vld [vmem:[%s197_s22] sm:$0xff]  ;;  %s305_s25 = scalar_select %p304_p5, 1, 0 }
  0x16   : > { %223 = vst [vmem:[#allocation1] ss:$2 sm:$0xff] %v218_v1  ;;  %v219_v22 = vld [vmem:[%s206_s28] sm:$0x3]  ;;  %s211_s8 = scalar_lea.vmem %s783_s3, %s555_s19 }
  0x17   : > { %v306_v23 = vstv %s305_s25  ;;  %vm303_vm1 = vcmp.eq.s32.totalorder %v219_v22, 255 }
  0x18   : > { %vm307_vm2 = vcmp.eq.s32.totalorder %v306_v23, 1  ;;  %vm712_vm5 = vmxor %vm303_vm1, %vm643_vm4 }
  0x19   : > { %vm308_vm3 = vmand %vm307_vm2, %vm303_vm1  ;;  %v552_v40 = vsel %vm712_vm5, 1.0, %v642_v0 }
  0x1a   : > { %v703_v27 = vsel %vm308_vm3, %v309_v25, %v219_v22 }
  0x1b   : > { %v313_v35 = vperm.slane %v703_v27, 0  ;;  %v314_v36 = vperm.slane %v703_v27, 1  ;;  %v381_v43 = vld [vmem:[#allocation2 + $0x1] ss:$8 sm:$0x3]  ;;  %vm340_vm10 = vcmp.ge.s32.totalorder %v703_v27, 0 }
  0x1c   : > { %v382_v45 = vadd.f32 %v552_v40, %v381_v43  ;;  %vm341_vm1 = vcmp.lt.s32.totalorder %v703_v27, 4 }
  0x1d   : > { %v224_v2 = vld.sshfl [vmem:[#allocation1] sm:$0xff pattern:$0x75316420]  ;;  %v225_v3 = vld.sshfl [vmem:[#allocation1 + $0x8] sm:$0xff pattern:$0x75316420]  ;;  %vm315_vm6 = vcmp.eq.s32.totalorder %v707_v32, %v313_v35  ;;  %vm316_vm7 = vcmp.eq.s32.totalorder %v707_v32, %v314_v36  ;;  %vm342_vm3 = vmand %vm340_vm10, %vm341_vm1 }
  0x1e   : > { %v229_v4 = vsel %vm228_vm0, %v224_v2, -inf  ;;  %v236_v5 = vsel %vm228_vm0, %v225_v3, -inf  ;;  %383 = vst.msk [vmem:[#allocation2 + $0x1] ss:$8 sm:$0x3] %vm721_vm8, %v382_v45 }
  0x1f   : > { %v230_v6 = vrot.slane %v229_v4, 4  ;;  %v237_v7 = vrot.slane %v236_v5, 4 }
  0x21   : > { %v231_v8 = vmax.f32 %v229_v4, %v230_v6  ;;  %v238_v9 = vmax.f32 %v236_v5, %v237_v7 }
  0x23   : > { %v232_v10 = vrot.slane %v231_v8, 2  ;;  %v239_v11 = vrot.slane %v238_v9, 2 }
  0x25   : > { %v233_v12 = vmax.f32 %v231_v8, %v232_v10  ;;  %v240_v13 = vmax.f32 %v238_v9, %v239_v11 }
  0x27   : > { %v234_v14 = vrot.slane %v233_v12, 1  ;;  %v241_v15 = vrot.slane %v240_v13, 1 }
  0x29   : > { %v235_v16 = vmax.f32 %v233_v12, %v234_v14  ;;  %v242_v17 = vmax.f32 %v240_v13, %v241_v15 }
  0x2b   : > { %v245_v18 = vrot.slane %v242_v17, 4 }
  0x2d   : > { %v246_v19 = vsel %vm228_vm0, %v235_v16, %v245_v18 }
  0x2e   : > { %v248_v20 = vsub.f32 %v218_v1, %v246_v19 }
  0x30   : > { %v249_v21 = vmul.f32 1.442695, %v248_v20 }
  0x32   : > { %589 = vpow2.f32 %v249_v21 }
  0x38   : > { %v590_v24 = vpop.eup %589 }
  0x39   : > { %252 = vst [vmem:[#allocation1] ss:$2 sm:$0xff] %v590_v24 }
  0x40   : > { %v253_v28 = vld.sshfl [vmem:[#allocation1] sm:$0xff pattern:$0x75316420]  ;;  %v254_v29 = vld.sshfl [vmem:[#allocation1 + $0x8] sm:$0xff pattern:$0x75316420] }
  0x41   : > { %v257_v30 = vsel %vm228_vm0, %v253_v28, 0.0  ;;  %v264_v31 = vsel %vm228_vm0, %v254_v29, 0.0  ;;  %318 = vst [vmem:[#allocation1] ss:$2 sm:$0xff] %v248_v20 }
  0x42   : > { %v258_v33 = vrot.slane %v257_v30, 4  ;;  %v265_v34 = vrot.slane %v264_v31, 4 }
  0x44   : > { %v259_v38 = vadd.f32 %v258_v33, %v257_v30  ;;  %v266_v39 = vadd.f32 %v265_v34, %v264_v31  ;;  %v372_v31 = vld [vmem:[#allocation2] ss:$8 sm:$0x3] }
  0x46   : > { %v260_v41 = vrot.slane %v259_v38, 2  ;;  %v267_v42 = vrot.slane %v266_v39, 2 }
  0x48   : > { %v261_v46 = vadd.f32 %v260_v41, %v259_v38  ;;  %v268_v47 = vadd.f32 %v267_v42, %v266_v39  ;;  %v319_v48 = vld.sshfl [vmem:[#allocation1] sm:$0xff pattern:$0x75316420]  ;;  %v320_v49 = vld.sshfl [vmem:[#allocation1 + $0x8] sm:$0xff pattern:$0x75316420] }
  0x49   : > { %v323_v50 = vsel %vm315_vm6, %v319_v48, 0.0  ;;  %v324_v51 = vsel %vm316_vm7, %v320_v49, 0.0  ;;  %v551_v48 = vsel %vm342_vm3, 1.0, %v642_v0  ;;  %vm450_vm6 = vcmp.eq.s32.totalorder %v707_v32, 1 }
  0x4a   : > { %v262_v52 = vrot.slane %v261_v46, 1  ;;  %v269_v53 = vrot.slane %v268_v47, 1  ;;  %v325_v54 = vsel %vm228_vm0, %v323_v50, 0.0  ;;  %v332_v55 = vsel %vm228_vm0, %v324_v51, 0.0 }
  0x4b   : > { %v326_v56 = vrot.slane %v325_v54, 4  ;;  %v333_v57 = vrot.slane %v332_v55, 4  ;;  %vm454_vm7 = vcmp.eq.s32.totalorder %v707_v32, 2 }
  0x4c   : > { %v263_v58 = vadd.f32 %v262_v52, %v261_v46  ;;  %v270_v59 = vadd.f32 %v269_v53, %v268_v47  ;;  %v386_v52 = vld [vmem:[#allocation2 + $0x2] ss:$8 sm:$0x3] }
  0x4d   : > { %v327_v60 = vadd.f32 %v326_v56, %v325_v54  ;;  %v334_v61 = vadd.f32 %v333_v57, %v332_v55  ;;  %v411_v55 = vld [vmem:[#allocation2 + $0x1] ss:$8 sm:$0x3] }
  0x4e   : > { %591 = vrcp.f32 %v270_v59  ;;  %v296_v6 = vand.u32 2147483648, %v270_v59  ;;  %vm290_vm11 = vweird.f32 %v270_v59  ;;  %v294_v12 = vand.u32 2147483647, %v270_v59 }
  0x4f   : > { %593 = vlog2.f32 %v263_v58  ;;  %v328_v62 = vrot.slane %v327_v60, 2  ;;  %v335_v63 = vrot.slane %v334_v61, 2  ;;  %vm276_vm12 = vweird.f32 %v263_v58 }
  0x50   : > { %595 = vlog2.f32 %v270_v59  ;;  %v297_v18 = vor.u32 1.1754944e-38, %v296_v6  ;;  %v282_v21 = vand.u32 2147483648, %v263_v58  ;;  %v280_v28 = vand.u32 2147483647, %v263_v58 }
  0x51   : > { %v329_v1 = vadd.f32 %v328_v62, %v327_v60  ;;  %v336_v2 = vadd.f32 %v335_v63, %v334_v61  ;;  %597 = vrcp.f32 %v263_v58  ;;  %vm295_vm0 = vcmp.eq.f32.partialorder %v294_v12, 8.507059e+37 }
  0x52   : > { %v283_v38 = vor.u32 1.1754944e-38, %v282_v21  ;;  %vm281_vm4 = vcmp.eq.f32.partialorder %v280_v28, 8.507059e+37  ;;  %v413_v60 = vperm.slane %v411_v55, 0  ;;  %v414_v61 = vperm.slane %v411_v55, 1 }
  0x53   : > { %v330_v3 = vrot.slane %v329_v1, 1  ;;  %v337_v4 = vrot.slane %v336_v2, 1 }
  0x54   : > { %v592_v5 = vpop.eup %591  ;;  %v417_v63 = vsel %vm352_vm9, %v413_v60, 0.0 }
  0x55   : > { %v594_v7 = vpop.eup %593  ;;  %v286_v8 = vmul.f32 %v592_v5, %v270_v59  ;;  %v331_v9 = vadd.f32 %v330_v3, %v329_v1  ;;  %v338_v10 = vadd.f32 %v337_v4, %v336_v2  ;;  %vm291_vm13 = vweird.f32 %v592_v5 }
  0x56   : > { %v596_v11 = vpop.eup %595  ;;  %v300_v13 = vmul.f32 0.6931472, %v594_v7  ;;  %vm731_vm14 = vmor %vm290_vm11, %vm291_vm13  ;;  %v418_v1 = vsel %vm352_vm9, %v414_v61, 0.0 }
  0x57   : > { %v598_v14 = vpop.eup %597  ;;  %v287_v15 = vsub.f32 1.0, %v286_v8  ;;  %v302_v16 = vmul.f32 0.6931472, %v596_v11  ;;  %v345_v17 = vmul.f32 1.442695, %v331_v9  ;;  %v419_v3 = vadd.f32 %v418_v1, %v417_v63 }
  0x58   : > { %v347_v19 = vmul.f32 1.442695, %v338_v10  ;;  %v272_v20 = vmul.f32 %v598_v14, %v263_v58  ;;  %v362_v23 = vsub.f32 %v300_v13, %v331_v9  ;;  %vm277_vm15 = vweird.f32 %v598_v14 }
  0x59   : > { %v288_v22 = vmul.f32 %v592_v5, %v287_v15  ;;  %599 = vpow2.f32 %v345_v17  ;;  %v363_v24 = vsub.f32 %v302_v16, %v338_v10  ;;  %vm740_vm2 = vmor %vm276_vm12, %vm277_vm15 }
  0x5a   : > { %601 = vpow2.f32 %v347_v19  ;;  %v273_v26 = vsub.f32 1.0, %v272_v20 }
  0x5b   : > { %v289_v29 = vadd.f32 %v592_v5, %v288_v22  ;;  %v366_v30 = vrot.slane %v363_v24, 7 }
  0x5c   : > { %v274_v33 = vmul.f32 %v598_v14, %v273_v26 }
  0x5d   : > { %v293_v34 = vsel %vm731_vm14, %v592_v5, %v289_v29  ;;  %v367_v35 = vsel %vm352_vm9, %v362_v23, %v366_v30 }
  0x5e   : > { %v298_v39 = vsel %vm295_vm0, %v297_v18, %v293_v34  ;;  %v369_v40 = vsel %vm712_vm5, %v367_v35, 0.0  ;;  %v275_v41 = vadd.f32 %v598_v14, %v274_v33  ;;  %vm447_vm5 = vcmp.eq.s32.totalorder %v707_v32, 0 }
  0x5f   : > { %v600_v42 = vpop.eup %599  ;;  %v358_v43 = vrot.slane %v298_v39, 7  ;;  %v373_v45 = vadd.f32 %v372_v31, %v369_v40 }
  0x60   : > { %v602_v46 = vpop.eup %601  ;;  %v279_v47 = vsel %vm740_vm2, %v598_v14, %v275_v41 }
  0x61   : > { %v351_v49 = vrot.slane %v602_v46, 7  ;;  %378 = vst.msk [vmem:[#allocation2] ss:$8 sm:$0x3] %vm721_vm8, %v373_v45  ;;  %v284_v27 = vsel %vm281_vm4, %v283_v38, %v279_v47 }
  0x62   : > { %v359_v37 = vsel %vm352_vm9, %v284_v27, %v358_v43 }
  0x63   : > { %v353_v50 = vsel %vm352_vm9, %v600_v42, %v351_v49 }
  0x64   : > { %v355_v51 = vmul.f32 %v551_v48, %v353_v50 }
  0x66   : > { %v361_v53 = vmul.f32 %v359_v37, %v355_v51 }
  0x68   : > { %v393_v54 = vld [vmem:[#allocation2] ss:$8 sm:$0x3]  ;;  %v387_v56 = vadd.f32 %v386_v52, %v361_v53 }
  0x69   : > { %v395_v57 = vperm.slane %v393_v54, 0  ;;  %v396_v58 = vperm.slane %v393_v54, 1 }
  0x6a   : > { %388 = vst.msk [vmem:[#allocation2 + $0x2] ss:$8 sm:$0x3] %vm721_vm8, %v387_v56 }
  0x6b   : > { %v399_v0 = vsel %vm352_vm9, %v395_v57, 0.0  ;;  %v400_v59 = vsel %vm352_vm9, %v396_v58, 0.0 }
  0x6c   : > { %v401_v62 = vadd.f32 %v400_v59, %v399_v0 }
  0x6e   : > { %402 = vadd.xlane.f32.xlu0 %v401_v62 }
  0x71   : > { %v429_v2 = vld [vmem:[#allocation2 + $0x2] ss:$8 sm:$0x3] }
  0x72   : > { %v431_v4 = vperm.slane %v429_v2, 0  ;;  %v432_v5 = vperm.slane %v429_v2, 1 }
  0x74   : > { %v435_v6 = vsel %vm352_vm9, %v431_v4, 0.0  ;;  %v436_v44 = vsel %vm352_vm9, %v432_v5, 0.0 }
  0x75   : > { %v437_v7 = vadd.f32 %v436_v44, %v435_v6 }
  0x76   : > { %420 = vadd.xlane.f32.xlu0 %v419_v3 }
  0x77   : > { %438 = vadd.xlane.f32.xlu1 %v437_v7 }
  0xe1   : > { %v403_v8 = vpop.xlane.xlu0 %402 }
  0xe2   : > { %v404_v9 = vrot.slane %v403_v8, 4 }
  0xe4   : > { %v405_v10 = vadd.f32 %v404_v9, %v403_v8 }
  0xe6   : > { %v406_v11 = vrot.slane %v405_v10, 2 }
  0xe8   : > { %v407_v12 = vadd.f32 %v406_v11, %v405_v10 }
  0xe9   : > { %v421_v13 = vpop.xlane.xlu0 %420 }
  0xea   : > { %v422_v14 = vrot.slane %v421_v13, 4  ;;  %v439_v15 = vpop.xlane.xlu1 %438  ;;  %v408_v16 = vrot.slane %v407_v12, 1 }
  0xeb   : > { %v440_v17 = vrot.slane %v439_v15, 4 }
  0xec   : > { %v423_v18 = vadd.f32 %v422_v14, %v421_v13  ;;  %v409_v19 = vadd.f32 %v408_v16, %v407_v12 }
  0xed   : > { %v441_v20 = vadd.f32 %v440_v17, %v439_v15 }
  0xee   : > { %v424_v21 = vrot.slane %v423_v18, 2  ;;  %556 = vpush %v409_v19 }
  0xef   : > { %v442_v22 = vrot.slane %v441_v20, 2 }
  0xf0   : > { %v425_v23 = vadd.f32 %v424_v21, %v423_v18 }
  0xf1   : > { %v443_v24 = vadd.f32 %v442_v22, %v441_v20 }
  0xf2   : > { %v426_v25 = vrot.slane %v425_v23, 1 }
  0xf3   : > { %v444_v26 = vrot.slane %v443_v24, 1 }
  0xf4   : > { %v427_v28 = vadd.f32 %v426_v25, %v425_v23 }
  0xf5   : > { %v445_v29 = vadd.f32 %v444_v26, %v443_v24 }
  0xf6   : > { %558 = vpush %v427_v28 }
  0xf7   : > { %560 = vpush %v445_v29 }
 0x11f   : > { %s557_s30 = spop %556 }
 0x120   : > { %v448_v30 = vstv %s557_s30 }
 0x121   : > { %v449_v33 = vsel %vm447_vm5, %v448_v30, 0.0 }
 0x127   : > { %s559_s4 = spop %558 }
 0x128   : > { %v451_v31 = vstv %s559_s4  ;;  %s561_s5 = spop %560 }
 0x129   : > { %v452_v34 = vsel %vm450_vm6, %v451_v31, 0.0  ;;  %v455_v35 = vstv %s561_s5 }
 0x12a   : > { %v453_v36 = vadd.f32 %v452_v34, %v449_v33  ;;  %v456_v38 = vsel %vm454_vm7, %v455_v35, 0.0 }
 0x12c   : > { %v457_v39 = vadd.f32 %v456_v38, %v453_v36 }
 0x12e   : > { %458 = vst [vmem:[%s211_s8] sm:$0xff] %v457_v39 }
 0x12f PF: > { %s21_s18 = sadd.s32 1, %s639_s18   ;;  %s792_s16 = smov %s635_s17 }
 0x130   : > { %p18_p6 = scmp.ge.s32.totalorder %s21_s18, 4   ;;  %s793_s17 = smov %s795_s0 }
 0x132   :  { %20 = sbr.rel (!%p18_p6) target bundleno = 8 (0x8), region = 71 }

</bundles_post_ra>
